<compile_context>
chip_gen: v5e
topology: v5e:2x2
jax: 0.10.0
libtpu: 0.0.40
codegen_flags: <defaults>
</compile_context>

<pallas_src>
import jax
import jax.numpy as jnp
from jax.experimental import pallas as pl
from jax.experimental.pallas import tpu as pltpu


def _round_up(x, m):
    return ((x + m - 1) // m) * m


def dqn_mlp_kernel(x_ref, w1_ref, b1_ref, w2_ref, b2_ref, w3_ref, b3_ref, o_ref):
    # x_ref: [TB, Din_p] bf16; weights bf16; biases f32 [1, H]; o_ref f32 [TB, Dout_p].
    x = x_ref[...]

    h1 = jnp.dot(x, w1_ref[...], preferred_element_type=jnp.float32)      # MXU bf16 -> f32 acc
    h1 = jnp.maximum(h1 + b1_ref[...], 0.0)                               # f32 epilogue (VPU)
    h1 = h1.astype(jnp.bfloat16)

    h2 = jnp.dot(h1, w2_ref[...], preferred_element_type=jnp.float32)
    h2 = jnp.maximum(h2 + b2_ref[...], 0.0)
    h2 = h2.astype(jnp.bfloat16)

    out = jnp.dot(h2, w3_ref[...], preferred_element_type=jnp.float32) + b3_ref[...]
    o_ref[...] = out.astype(o_ref.dtype)


def dqn_forward(x, params, *, block_b=256):
    """x: [B, num_inputs] float32. params: dict of w1,b1,w2,b2,w3,b3 (f32, [in,out] / [1,out])."""
    w1, b1, w2, b2, w3, b3 = (params[k] for k in ("w1", "b1", "w2", "b2", "w3", "b3"))

    B, din = x.shape
    h1 = w1.shape[1]           # 128
    h2 = w2.shape[1]           # 256
    dout = w3.shape[1]

    # Lane-dense padding (multiples of 128 on the feature/lane axis).
    din_p = _round_up(din, 128)
    dout_p = _round_up(dout, 128)

    # Batch tile: big enough to fill the MXU (256 rows for v6e/v7x 2x256 geometry),
    # but no bigger than the (8-aligned) batch itself for tiny test batches.
    tb = min(block_b, _round_up(B, 8))
    b_p = _round_up(B, tb)

    # Wrapper-side layout plumbing: zero-pad + cast MXU operands to bf16.
    x_p = jnp.pad(x, ((0, b_p - B), (0, din_p - din))).astype(jnp.bfloat16)
    w1_p = jnp.pad(w1, ((0, din_p - din), (0, 0))).astype(jnp.bfloat16)
    w2_p = w2.astype(jnp.bfloat16)
    w3_p = jnp.pad(w3, ((0, 0), (0, dout_p - dout))).astype(jnp.bfloat16)
    b1_p = b1.astype(jnp.float32)
    b2_p = b2.astype(jnp.float32)
    b3_p = jnp.pad(b3, ((0, 0), (0, dout_p - dout))).astype(jnp.float32)

    grid = (b_p // tb,)

    cost = pl.CostEstimate(
        flops=2 * b_p * (din_p * h1 + h1 * h2 + h2 * dout_p),
        transcendentals=0,
        bytes_accessed=(
            x_p.size * 2
            + (w1_p.size + w2_p.size + w3_p.size) * 2
            + (b1_p.size + b2_p.size + b3_p.size) * 4
            + b_p * dout_p * 4
        ),
    )

    out_p = pl.pallas_call(
        dqn_mlp_kernel,
        out_shape=jax.ShapeDtypeStruct((b_p, dout_p), jnp.float32),
        grid=grid,
        in_specs=[
            pl.BlockSpec((tb, din_p), lambda i: (i, 0)),      # x tile (pipelined per step)
            pl.BlockSpec((din_p, h1), lambda i: (0, 0)),      # weights: constant block index
            pl.BlockSpec((1, h1), lambda i: (0, 0)),          #   -> resident in VMEM across steps
            pl.BlockSpec((h1, h2), lambda i: (0, 0)),
            pl.BlockSpec((1, h2), lambda i: (0, 0)),
            pl.BlockSpec((h2, dout_p), lambda i: (0, 0)),
            pl.BlockSpec((1, dout_p), lambda i: (0, 0)),
        ],
        out_specs=pl.BlockSpec((tb, dout_p), lambda i: (i, 0)),
        compiler_params=pltpu.CompilerParams(
            dimension_semantics=("parallel",),                # megacore sharding on v7x
        ),
        cost_estimate=cost,
    )(x_p, w1_p, b1_p, w2_p, b2_p, w3_p, b3_p)

    return out_p[:B, :dout]


def init_params(key, num_inputs, num_outputs):
    """PyTorch nn.Linear-style init, weights stored as [in, out], biases [1, out]."""
    k1, k2, k3, k4, k5, k6 = jax.random.split(key, 6)

    def lin(kw, kb, fan_in, fan_out):
        bound = 1.0 / jnp.sqrt(fan_in)
        w = jax.random.uniform(kw, (fan_in, fan_out), jnp.float32, -bound, bound)
        b = jax.random.uniform(kb, (1, fan_out), jnp.float32, -bound, bound)
        return w, b

    w1, b1 = lin(k1, k2, num_inputs, 128)
    w2, b2 = lin(k3, k4, 128, 256)
    w3, b3 = lin(k5, k6, 256, num_outputs)
    return dict(w1=w1, b1=b1, w2=w2, b2=b2, w3=w3, b3=b3)


def dqn_forward_ref(x, p):
    h1 = jnp.maximum(x @ p["w1"] + p["b1"], 0.0)
    h2 = jnp.maximum(h1 @ p["w2"] + p["b2"], 0.0)
    return h2 @ p["w3"] + p["b3"]


if __name__ == "__main__":
    key = jax.random.PRNGKey(0)
    kx, kp = jax.random.split(key)

    batch = 2
    num_inputs = 32   # DQN state-vector size (small, synthetic)
    num_outputs = 8   # number of discrete actions

    x = jax.random.normal(kx, (batch, num_inputs), jnp.float32)
    params = init_params(kp, num_inputs, num_outputs)

    out = dqn_forward(x, params)
    out = jax.block_until_ready(out)

    ref = dqn_forward_ref(x, params)          # pure f32 reference
    assert out.shape == (batch, num_outputs)
    # Tolerance loosened vs the f32 reference because the kernel uses bf16 MXU operands
    # (f32 accumulation) -- a precision tradeoff, not a bug.
    assert jnp.allclose(out, ref, atol=3e-2, rtol=3e-2), "mismatch vs reference"

    print("KERNEL_OK")
</pallas_src>

<mosaic_0001>
module attributes {stable_mosaic.version = 11 : i64} {
  func.func @dqn_mlp_kernel(%arg0: i32, %arg1: memref<8x128xbf16, #tpu.memory_space<vmem>>, %arg2: memref<128x128xbf16, #tpu.memory_space<vmem>>, %arg3: memref<1x128xf32, #tpu.memory_space<vmem>>, %arg4: memref<128x256xbf16, #tpu.memory_space<vmem>>, %arg5: memref<1x256xf32, #tpu.memory_space<vmem>>, %arg6: memref<256x128xbf16, #tpu.memory_space<vmem>>, %arg7: memref<1x128xf32, #tpu.memory_space<vmem>>, %arg8: memref<8x128xf32, #tpu.memory_space<vmem>>) attributes {dimension_semantics = [#tpu.dimension_semantics<parallel>], iteration_bounds = array<i64: 1>, scalar_prefetch = 0 : i64, scratch_operands = 0 : i64, tpu.core_type = #tpu.core_type<tc>, window_params = [{transform_indices = @transform_0, window_bounds = array<i64: 8, 128>}, {pipeline_mode = #tpu.pipeline_mode<synchronous>, transform_indices = @transform_1, window_bounds = array<i64: 128, 128>}, {pipeline_mode = #tpu.pipeline_mode<synchronous>, transform_indices = @transform_2, window_bounds = array<i64: 1, 128>}, {pipeline_mode = #tpu.pipeline_mode<synchronous>, transform_indices = @transform_3, window_bounds = array<i64: 128, 256>}, {pipeline_mode = #tpu.pipeline_mode<synchronous>, transform_indices = @transform_4, window_bounds = array<i64: 1, 256>}, {pipeline_mode = #tpu.pipeline_mode<synchronous>, transform_indices = @transform_5, window_bounds = array<i64: 256, 128>}, {pipeline_mode = #tpu.pipeline_mode<synchronous>, transform_indices = @transform_6, window_bounds = array<i64: 1, 128>}, {transform_indices = @transform_7, window_bounds = array<i64: 8, 128>}]} {
    %c0 = arith.constant 0 : index
    %c0_0 = arith.constant 0 : index
    %0 = vector.load %arg1[%c0, %c0_0] : memref<8x128xbf16, #tpu.memory_space<vmem>>, vector<8x128xbf16>
    %c0_1 = arith.constant 0 : index
    %c0_2 = arith.constant 0 : index
    %1 = vector.load %arg2[%c0_1, %c0_2] : memref<128x128xbf16, #tpu.memory_space<vmem>>, vector<128x128xbf16>
    %cst = arith.constant dense<0.000000e+00> : vector<8x128xf32>
    %2 = tpu.matmul %0, %1, %cst {dimension_numbers = #tpu.dot_dimension_numbers<[1], [0], [0], [1], [0, 0, 1, 1], [], []>} : vector<8x128xbf16>, vector<128x128xbf16>, vector<8x128xf32> -> vector<8x128xf32>
    %c0_3 = arith.constant 0 : index
    %c0_4 = arith.constant 0 : index
    %3 = vector.load %arg3[%c0_3, %c0_4] : memref<1x128xf32, #tpu.memory_space<vmem>>, vector<1x128xf32>
    %4 = vector.broadcast %3 : vector<1x128xf32> to vector<8x128xf32>
    %5 = arith.addf %2, %4 : vector<8x128xf32>
    %cst_5 = arith.constant 0.000000e+00 : f32
    %6 = vector.broadcast %cst_5 : f32 to vector<8x128xf32>
    %7 = arith.maximumf %5, %6 : vector<8x128xf32>
    %8 = arith.truncf %7 : vector<8x128xf32> to vector<8x128xbf16>
    %c0_6 = arith.constant 0 : index
    %c0_7 = arith.constant 0 : index
    %9 = vector.load %arg4[%c0_6, %c0_7] : memref<128x256xbf16, #tpu.memory_space<vmem>>, vector<128x256xbf16>
    %cst_8 = arith.constant dense<0.000000e+00> : vector<8x256xf32>
    %10 = tpu.matmul %8, %9, %cst_8 {dimension_numbers = #tpu.dot_dimension_numbers<[1], [0], [0], [1], [0, 0, 1, 1], [], []>} : vector<8x128xbf16>, vector<128x256xbf16>, vector<8x256xf32> -> vector<8x256xf32>
    %c0_9 = arith.constant 0 : index
    %c0_10 = arith.constant 0 : index
    %11 = vector.load %arg5[%c0_9, %c0_10] : memref<1x256xf32, #tpu.memory_space<vmem>>, vector<1x256xf32>
    %12 = vector.broadcast %11 : vector<1x256xf32> to vector<8x256xf32>
    %13 = arith.addf %10, %12 : vector<8x256xf32>
    %cst_11 = arith.constant 0.000000e+00 : f32
    %14 = vector.broadcast %cst_11 : f32 to vector<8x256xf32>
    %15 = arith.maximumf %13, %14 : vector<8x256xf32>
    %16 = arith.truncf %15 : vector<8x256xf32> to vector<8x256xbf16>
    %c0_12 = arith.constant 0 : index
    %c0_13 = arith.constant 0 : index
    %17 = vector.load %arg6[%c0_12, %c0_13] : memref<256x128xbf16, #tpu.memory_space<vmem>>, vector<256x128xbf16>
    %cst_14 = arith.constant dense<0.000000e+00> : vector<8x128xf32>
    %18 = tpu.matmul %16, %17, %cst_14 {dimension_numbers = #tpu.dot_dimension_numbers<[1], [0], [0], [1], [0, 0, 1, 1], [], []>} : vector<8x256xbf16>, vector<256x128xbf16>, vector<8x128xf32> -> vector<8x128xf32>
    %c0_15 = arith.constant 0 : index
    %c0_16 = arith.constant 0 : index
    %19 = vector.load %arg7[%c0_15, %c0_16] : memref<1x128xf32, #tpu.memory_space<vmem>>, vector<1x128xf32>
    %20 = vector.broadcast %19 : vector<1x128xf32> to vector<8x128xf32>
    %21 = arith.addf %18, %20 : vector<8x128xf32>
    %c0_17 = arith.constant 0 : index
    %c0_18 = arith.constant 0 : index
    %22 = vector.load %arg8[%c0_17, %c0_18] : memref<8x128xf32, #tpu.memory_space<vmem>>, vector<8x128xf32>
    tpu.vector_store %arg8[%c0_17, %c0_18], %21 {strides = array<i32>} : memref<8x128xf32, #tpu.memory_space<vmem>>, vector<8x128xf32>,
    return
  }
  func.func @transform_0(%arg0: i32) -> (i32, i32) {
    %c0_i32 = arith.constant 0 : i32
    %c0_i32_0 = arith.constant 0 : i32
    return %arg0, %c0_i32 : i32, i32
  }
  func.func @transform_1(%arg0: i32) -> (i32, i32) {
    %c0_i32 = arith.constant 0 : i32
    %c0_i32_0 = arith.constant 0 : i32
    %c0_i32_1 = arith.constant 0 : i32
    return %c0_i32, %c0_i32_0 : i32, i32
  }
  func.func @transform_2(%arg0: i32) -> (i32, i32) {
    %c0_i32 = arith.constant 0 : i32
    %c0_i32_0 = arith.constant 0 : i32
    %c0_i32_1 = arith.constant 0 : i32
    return %c0_i32, %c0_i32_0 : i32, i32
  }
  func.func @transform_3(%arg0: i32) -> (i32, i32) {
    %c0_i32 = arith.constant 0 : i32
    %c0_i32_0 = arith.constant 0 : i32
    %c0_i32_1 = arith.constant 0 : i32
    return %c0_i32, %c0_i32_0 : i32, i32
  }
  func.func @transform_4(%arg0: i32) -> (i32, i32) {
    %c0_i32 = arith.constant 0 : i32
    %c0_i32_0 = arith.constant 0 : i32
    %c0_i32_1 = arith.constant 0 : i32
    return %c0_i32, %c0_i32_0 : i32, i32
  }
  func.func @transform_5(%arg0: i32) -> (i32, i32) {
    %c0_i32 = arith.constant 0 : i32
    %c0_i32_0 = arith.constant 0 : i32
    %c0_i32_1 = arith.constant 0 : i32
    return %c0_i32, %c0_i32_0 : i32, i32
  }
  func.func @transform_6(%arg0: i32) -> (i32, i32) {
    %c0_i32 = arith.constant 0 : i32
    %c0_i32_0 = arith.constant 0 : i32
    %c0_i32_1 = arith.constant 0 : i32
    return %c0_i32, %c0_i32_0 : i32, i32
  }
  func.func @transform_7(%arg0: i32) -> (i32, i32) {
    %c0_i32 = arith.constant 0 : i32
    %c0_i32_0 = arith.constant 0 : i32
    return %arg0, %c0_i32 : i32, i32
  }
}

</mosaic_0001>

<bundles_post_ra>
// kernel: tpu_custom_call.1
= control target key start
LH: loop header
LB: loop body
LE: loop exit
PB: predicated region body
PF: predicated region fallthrough
CT: control target
= control target key end

     0   :  { %12 = vsyncpa [#allocation3], 0  ;;  %s894_s0 = inlined_call_operand.hbm [shape: bf16[8,128], index: 0, kind: input, shape index: {}]   ;;  %s895_s1 = inlined_call_operand.hbm [shape: bf16[128,128], index: 1, kind: input, shape index: {}]   ;;  %s896_s2 = inlined_call_operand.vmem [shape: f32[1,128], index: 2, kind: input, shape index: {}]   ;;  %s897_s3 = inlined_call_operand.hbm [shape: bf16[128,256], index: 3, kind: input, shape index: {}]   ;;  %s898_s4 = inlined_call_operand.vmem [shape: f32[1,256], index: 4, kind: input, shape index: {}]   ;;  %s899_s5 = inlined_call_operand.hbm [shape: bf16[256,128], index: 5, kind: input, shape index: {}]   ;;  %s900_s6 = inlined_call_operand.vmem [shape: f32[1,128], index: 6, kind: input, shape index: {}]   ;;  %s901_s7 = inlined_call_operand.hbm [shape: f32[8,128], index: 7, kind: output, shape index: {}]  }
   0x1   :  { %13 = vsyncpa [#allocation6], 0 }
   0x2   :  { %14 = vsyncpa [#allocation9], 0  ;;  %s31_s26 = sshll.u32 %s895_s1, 4  ;;  %s32_s26 = int_to_ptr.hbm [resolvable:$true] %s31_s26 }
   0x3   :  { %15 = vsyncpa [#allocation4], 0  ;;  %s821_s27 = smov [#allocation5]   ;;  %s21_s8 = sshll.u32 %s894_s0, 4  ;;  %s22_s8 = int_to_ptr.hbm [resolvable:$true] %s21_s8 }
   0x4   :  { %s33_s28 = sshll.u32 %s821_s27, 4  ;;  %s822_s9 = smov 64   ;;  %s34_s28 = int_to_ptr.vmem [resolvable:$true] %s33_s28 }
   0x5   :  { %s823_s10 = smov 4   ;;  %s824_s11 = smov [#allocation2]  }
   0x6   :  { %39 = dma.hbm_to_vmem [thread:$0]  %s32_s26, 1024, %s34_s28, [#allocation6], %s822_s9, %s822_s9, %s823_s10  }
   0x7   :  { %s23_s12 = sshll.u32 %s824_s11, 4  ;;  %s46_s15 = sshll.u32 %s897_s3, 4  ;;  %s24_s12 = int_to_ptr.vmem [resolvable:$true] %s23_s12  ;;  %s47_s15 = int_to_ptr.hbm [resolvable:$true] %s46_s15 }
   0x8   :  { %26 = dma.hbm_to_vmem [thread:$0]  %s22_s8, 64, %s24_s12, [#allocation3]  }
   0x9   :  { %s825_s1 = smov [#allocation7]   ;;  %s61_s0 = sshll.u32 %s899_s5, 4  ;;  %s62_s0 = int_to_ptr.hbm [resolvable:$true] %s61_s0 }
   0xa   :  { %s48_s16 = sshll.u32 %s825_s1, 4  ;;  %s826_s19 = smov 128   ;;  %s49_s16 = int_to_ptr.vmem [resolvable:$true] %s48_s16 }
   0xb   :  { %s827_s20 = smov 8   ;;  %s828_s21 = smov [#allocation8]  }
   0xc   :  { %54 = dma.hbm_to_vmem [thread:$0]  %s47_s15, 2048, %s49_s16, [#allocation6], %s826_s19, %s826_s19, %s827_s20  }
   0xd   :  { %s63_s22 = sshll.u32 %s828_s21, 4  ;;  %s64_s22 = int_to_ptr.vmem [resolvable:$true] %s63_s22 }
   0xe   :  { %69 = dma.hbm_to_vmem [thread:$0]  %s62_s0, 2048, %s64_s22, [#allocation9], %s822_s9, %s822_s9, %s823_s10  }
   0xf   :  { %813 = dma.done.wait [#allocation3], 64  }
  0x10   :  { %814 = vsyncadd [#allocation3], 4294967232 }
  0x11   :  { %815 = dma.done.wait [#allocation6], 3072  }
  0x12   :  { %816 = vsyncadd [#allocation6], 4294964224 }
  0x13   :  { %817 = dma.done.wait [#allocation9], 2048  }
  0x14   :  { %818 = vsyncadd [#allocation9], 4294965248  ;;  %v649_v0 = vld [vmem:[#allocation5 + $0x38] sm:$0xff]  ;;  %v648_v1 = vld [vmem:[#allocation5 + $0x30] sm:$0xff]  ;;  %s470_s29 = sshll.u32 %s901_s7, 4  ;;  %s471_s29 = int_to_ptr.hbm [resolvable:$true] %s470_s29 }
  0x15   :  { %157 = vmatpush.bf16.msra.mxu0 %v649_v0  ;;  %v572_v2 = vld [vmem:[#allocation7 + $0x70] sm:$0xf]  ;;  %v665_v3 = vld [vmem:[#allocation7 + $0x74] sm:$0xf0]  ;;  %v664_v4 = vld [vmem:[#allocation7 + $0x74] sm:$0xf] }
  0x16   :  { %v573_v5 = vor.u32 %v665_v3, %v572_v2  ;;  %v574_v6 = vld [vmem:[#allocation7 + $0x78] sm:$0xf0]  ;;  %v564_v7 = vld [vmem:[#allocation7 + $0x60] sm:$0xf]  ;;  %v663_v8 = vld [vmem:[#allocation7 + $0x64] sm:$0xf0] }
  0x17   :  { %v577_v9 = vor.u32 %v664_v4, %v574_v6  ;;  %v662_v10 = vld [vmem:[#allocation7 + $0x64] sm:$0xf]  ;;  %v566_v11 = vld [vmem:[#allocation7 + $0x68] sm:$0xf0]  ;;  %v565_v13 = vor.u32 %v663_v8, %v564_v7  ;;  %v556_v15 = vld [vmem:[#allocation7 + $0x50] sm:$0xf] }
  0x18   :  { %v647_v12 = vld [vmem:[#allocation5 + $0x28] sm:$0xff]  ;;  %274 = vmatpush.bf16.msra.mxu1 %v573_v5  ;;  %v569_v14 = vor.u32 %v662_v10, %v566_v11  ;;  %v661_v16 = vld [vmem:[#allocation7 + $0x54] sm:$0xf0]  ;;  %v660_v17 = vld [vmem:[#allocation7 + $0x54] sm:$0xf] }
  0x19   :  { %158 = vmatpush.bf16.msra.mxu0 %v648_v1  ;;  %287 = vmatpush.bf16.msra.mxu2 %v577_v9  ;;  %v558_v18 = vld [vmem:[#allocation7 + $0x58] sm:$0xf0]  ;;  %v646_v19 = vld [vmem:[#allocation5 + $0x20] sm:$0xff]  ;;  %v557_v20 = vor.u32 %v661_v16, %v556_v15  ;;  %v659_v23 = vld [vmem:[#allocation7 + $0x44] sm:$0xf0] }
  0x1a   :  { %v548_v21 = vld [vmem:[#allocation7 + $0x40] sm:$0xf]  ;;  %v561_v22 = vor.u32 %v660_v17, %v558_v18  ;;  %v658_v24 = vld [vmem:[#allocation7 + $0x44] sm:$0xf]  ;;  %v550_v25 = vld [vmem:[#allocation7 + $0x48] sm:$0xf0] }
  0x1b   :  { %v645_v26 = vld [vmem:[#allocation5 + $0x18] sm:$0xff]  ;;  %v549_v27 = vor.u32 %v659_v23, %v548_v21  ;;  %v553_v28 = vor.u32 %v658_v24, %v550_v25  ;;  %v540_v29 = vld [vmem:[#allocation7 + $0x30] sm:$0xf]  ;;  %v656_v31 = vld [vmem:[#allocation7 + $0x34] sm:$0xf] }
  0x1c   :  { %275 = vmatpush.bf16.msra.mxu1 %v565_v13  ;;  %v657_v30 = vld [vmem:[#allocation7 + $0x34] sm:$0xf0]  ;;  %v542_v32 = vld [vmem:[#allocation7 + $0x38] sm:$0xf0]  ;;  %v644_v33 = vld [vmem:[#allocation5 + $0x10] sm:$0xff] }
  0x1d   :  { %159 = vmatpush.bf16.msra.mxu0 %v647_v12  ;;  %288 = vmatpush.bf16.msra.mxu2 %v569_v14  ;;  %v541_v34 = vor.u32 %v657_v30, %v540_v29  ;;  %v545_v35 = vor.u32 %v656_v31, %v542_v32  ;;  %v532_v36 = vld [vmem:[#allocation7 + $0x20] sm:$0xf]  ;;  %v655_v37 = vld [vmem:[#allocation7 + $0x24] sm:$0xf0]  ;;  %v654_v38 = vld [vmem:[#allocation7 + $0x24] sm:$0xf] }
  0x1e   :  { %v534_v39 = vld [vmem:[#allocation7 + $0x28] sm:$0xf0]  ;;  %v533_v41 = vor.u32 %v655_v37, %v532_v36  ;;  %v642_v43 = vld [vmem:[#allocation5] sm:$0xff]  ;;  %v88_v44 = vld [vmem:[#allocation2] sm:$0xf] }
  0x1f   :  { %v643_v40 = vld [vmem:[#allocation5 + $0x8] sm:$0xff]  ;;  %v537_v42 = vor.u32 %v654_v38, %v534_v39  ;;  %v524_v45 = vld [vmem:[#allocation7 + $0x10] sm:$0xf]  ;;  %v653_v46 = vld [vmem:[#allocation7 + $0x14] sm:$0xf0] }
  0x20   :  { %276 = vmatpush.bf16.msra.mxu1 %v557_v20  ;;  %v652_v47 = vld [vmem:[#allocation7 + $0x14] sm:$0xf]  ;;  %v525_v48 = vor.u32 %v653_v46, %v524_v45  ;;  %v526_v49 = vld [vmem:[#allocation7 + $0x18] sm:$0xf0]  ;;  %v516_v51 = vld [vmem:[#allocation7] sm:$0xf] }
  0x21   :  { %160 = vmatpush.bf16.msra.mxu0 %v646_v19  ;;  %289 = vmatpush.bf16.msra.mxu2 %v561_v22  ;;  %v529_v50 = vor.u32 %v652_v47, %v526_v49  ;;  %v651_v52 = vld [vmem:[#allocation7 + $0x4] sm:$0xf0]  ;;  %v650_v53 = vld [vmem:[#allocation7 + $0x4] sm:$0xf]  ;;  %v518_v55 = vld [vmem:[#allocation7 + $0x8] sm:$0xf0] }
  0x22   :  { %v517_v54 = vor.u32 %v651_v52, %v516_v51  ;;  %v521_v56 = vor.u32 %v650_v53, %v518_v55  ;;  %v673_v57 = vld [vmem:[#allocation8 + $0x38] sm:$0xff]  ;;  %v672_v59 = vld [vmem:[#allocation8 + $0x30] sm:$0xff]  ;;  %v671_v61 = vld [vmem:[#allocation8 + $0x28] sm:$0xff] }
  0x23   :  { %v681_v58 = vld [vmem:[#allocation8 + $0x78] sm:$0xff]  ;;  %436 = vmatpush.bf16.msra.mxu3 %v673_v57  ;;  %v680_v60 = vld [vmem:[#allocation8 + $0x70] sm:$0xff]  ;;  %v679_v62 = vld [vmem:[#allocation8 + $0x68] sm:$0xff] }
  0x24   :  { %277 = vmatpush.bf16.msra.mxu1 %v549_v27  ;;  %v670_v63 = vld [vmem:[#allocation8 + $0x20] sm:$0xff]  ;;  %v669_v1 = vld [vmem:[#allocation8 + $0x18] sm:$0xff]  ;;  %v668_v3 = vld [vmem:[#allocation8 + $0x10] sm:$0xff] }
  0x25   :  { %161 = vmatpush.bf16.msra.mxu0 %v645_v26  ;;  %290 = vmatpush.bf16.msra.mxu2 %v553_v28  ;;  %v678_v0 = vld [vmem:[#allocation8 + $0x60] sm:$0xff]  ;;  %v677_v2 = vld [vmem:[#allocation8 + $0x58] sm:$0xff]  ;;  %v667_v10 = vld [vmem:[#allocation8 + $0x8] sm:$0xff] }
  0x26   :  { %v691_v4 = vld [vmem:[%s896_s2] ss:$0 sm:$0xff]  ;;  %v676_v11 = vld [vmem:[#allocation8 + $0x50] sm:$0xff]  ;;  %v666_v12 = vld [vmem:[#allocation8] sm:$0xff] }
  0x27   :  { %437 = vmatpush.bf16.msra.mxu3 %v672_v59  ;;  %v675_v13 = vld [vmem:[#allocation8 + $0x48] sm:$0xff]  ;;  %v674_v14 = vld [vmem:[#allocation8 + $0x40] sm:$0xff]  ;;  %v188_v15 = vld [vmem:[%s898_s4] sm:$0x3]  ;;  %s829_s4 = smov [#allocation10]  }
  0x28   :  { %278 = vmatpush.bf16.msra.mxu1 %v541_v34  ;;  %v190_v16 = vperm.slane %v188_v15, 0  ;;  %v191_v20 = vperm.slane %v188_v15, 1  ;;  %v692_v28 = vld [vmem:[%s900_s6] ss:$0 sm:$0xff]  ;;  %s468_s26 = sshll.u32 %s829_s4, 4  ;;  %s469_s26 = int_to_ptr.vmem [resolvable:$true] %s468_s26 }
  0x29   :  { %162 = vmatpush.bf16.msra.mxu0 %v644_v33  ;;  %291 = vmatpush.bf16.msra.mxu2 %v545_v35 }
  0x2b   :  { %438 = vmatpush.bf16.msra.mxu3 %v671_v61 }
  0x2c   :  { %279 = vmatpush.bf16.msra.mxu1 %v533_v41 }
  0x2d   :  { %163 = vmatpush.bf16.msra.mxu0 %v643_v40  ;;  %292 = vmatpush.bf16.msra.mxu2 %v537_v42 }
  0x2f   :  { %439 = vmatpush.bf16.msra.mxu3 %v670_v63 }
  0x30   :  { %280 = vmatpush.bf16.msra.mxu1 %v525_v48 }
  0x31   :  { %164 = vmatpush.bf16.msra.mxu0 %v642_v43  ;;  %293 = vmatpush.bf16.msra.mxu2 %v529_v50 }
  0x33   :  { %440 = vmatpush.bf16.msra.mxu3 %v669_v1 }
  0x34   :  { %165 = vmatmul.bf16.vlgmr.msra.gmra.mxu0 %v88_v44  ;;  %281 = vmatpush.bf16.msra.mxu1 %v517_v54 }
  0x35   :  { %294 = vmatpush.bf16.msra.mxu2 %v521_v56  ;;  %449 = vmatpush.bf16.msrb.mxu0 %v681_v58 }
  0x37   :  { %441 = vmatpush.bf16.msra.mxu3 %v668_v3 }
  0x39   :  { %450 = vmatpush.bf16.msrb.mxu0 %v680_v60 }
  0x3b   :  { %442 = vmatpush.bf16.msra.mxu3 %v667_v10 }
  0x3d   :  { %451 = vmatpush.bf16.msrb.mxu0 %v679_v62 }
  0x3f   :  { %443 = vmatpush.bf16.msra.mxu3 %v666_v12 }
  0x41   :  { %452 = vmatpush.bf16.msrb.mxu0 %v678_v0 }
  0x45   :  { %453 = vmatpush.bf16.msrb.mxu0 %v677_v2 }
  0x49   :  { %454 = vmatpush.bf16.msrb.mxu0 %v676_v11 }
  0x4d   :  { %455 = vmatpush.bf16.msrb.mxu0 %v675_v13 }
  0x51   :  { %456 = vmatpush.bf16.msrb.mxu0 %v674_v14 }
  0xb1   :  { %v166_v5 = vpop.f32.mrf.mxu0 }
  0xb2   :  { %v167_v6 = vadd.f32 %v691_v4, %v166_v5 }
  0xb4   :  { %v170_v7 = vmax.f32 %v167_v6, 0.0 }
  0xb6   :  { %v171_v8 = vpack.c.bf16 %v170_v7, %v170_v7 }
  0xb8   :  { %282 = vmatmul.bf16.vlgmr.msra.gmra.mxu1 %v171_v8  ;;  %295 = vmatmul.bf16.vlgmr.msra.gmra.mxu2 %v171_v8 }
  0xb9   :  { %v168_v9 = vpop.f32.mrf.mxu0 }
 0x135   :  { %v283_v17 = vpop.f32.mrf.mxu1 }
 0x136   :  { %v284_v18 = vadd.f32 %v283_v17, %v190_v16 }
 0x138   :  { %v300_v19 = vmax.f32 %v284_v18, 0.0 }
 0x13a   :  { %v302_v21 = vpack.c.bf16 %v300_v19, %v300_v19 }
 0x13b   :  { %v296_v22 = vpop.f32.mrf.mxu2 }
 0x13c   :  { %v297_v23 = vadd.f32 %v296_v22, %v191_v20  ;;  %444 = vmatmul.bf16.vlgmr.msra.gmra.mxu3 %v302_v21 }
 0x13d   :  { %v285_v24 = vpop.f32.mrf.mxu1 }
 0x13e   :  { %v301_v25 = vmax.f32 %v297_v23, 0.0 }
 0x140   :  { %v303_v26 = vpack.c.bf16 %v301_v25, %v301_v25 }
 0x142   :  { %457 = vmatmul.bf16.vlgmr.msrb.gmra.mxu0 %v303_v26 }
 0x143   :  { %v298_v27 = vpop.f32.mrf.mxu2 }
 0x1bf   :  { %v445_v29 = vpop.f32.mrf.mxu3  ;;  %v458_v30 = vpop.f32.mrf.mxu0 }
 0x1c0   :  { %v446_v31 = vadd.f32 %v692_v28, %v445_v29 }
 0x1c2   :  { %v459_v32 = vadd.f32 %v458_v30, %v446_v31 }
 0x1c4   :  { %462 = vst [vmem:[#allocation10] sm:$0xff] %v459_v32 }
 0x1c5   :  { %473 = dma.vmem_to_hbm [thread:$0]  %s469_s26, 128, %s471_s29, [#allocation4]  }
 0x1c7   :  { %v447_v33 = vpop.f32.mrf.mxu3  ;;  %v460_v34 = vpop.f32.mrf.mxu0 }
 0x1c8   :  { %819 = dma.done.wait [#allocation4], 128  }
 0x1c9   :  { %820 = vsyncadd [#allocation4], 4294967168 }
 0x1ca   :  { %478 = vsyncpa [#allocation3], 1 }
 0x1cb   :  { %479 = vsyncpa [#allocation6], 1 }
 0x1cc   :  { %480 = vsyncpa [#allocation9], 1 }
 0x1cd   :  { %481 = vsyncpa [#allocation4], 1 }

</bundles_post_ra>
